<compile_context>
chip_gen: v6e
topology: v6e:2x2x1
jax: 0.10.0
libtpu: 0.0.40
codegen_flags: <defaults>
</compile_context>

<pallas_src>
import jax
import jax.numpy as jnp
from jax import lax
from jax.experimental import pallas as pl
from jax.experimental.pallas import tpu as pltpu


def _fused_dwsep_kernel(patch_ref, w_ref, b_ref, out_ref):
    # patch_ref: (T*C, lane_tile)   lane-dense im2col slab tile
    # w_ref    : (OC, T*C)          fused depthwise+pointwise weight
    # b_ref    : (OC, 1)            fused bias (f32)
    # out_ref  : (OC, lane_tile)
    acc = jnp.dot(w_ref[...], patch_ref[...],
                  preferred_element_type=jnp.float32)
    out_ref[...] = (acc + b_ref[...]).astype(out_ref.dtype)


def depthwise_separable_conv2d(x, dw_weight, dw_bias, pw_weight, pw_bias,
                               kernel_size, stride=None, dilation=(1, 1),
                               compute_dtype=jnp.float32,
                               lane_tile_target=512):
    """x: (B, C, H, W). Weights follow PyTorch Conv2d shapes. Returns f32 NCHW."""
    if stride is None:
        stride = kernel_size  # PyTorch module default
    B, C, H, W = x.shape
    KH, KW = kernel_size
    SH, SW = stride
    DH, DW = dilation
    HO = (H - DH * (KH - 1) - 1) // SH + 1
    WO = (W - DW * (KW - 1) - 1) // SW + 1
    T = KH * KW
    P = HO * WO
    OC = pw_weight.shape[0]
    TC = T * C
    L = B * P                       # total output columns (lane axis)

    # ---- Glue (pure data movement): im2col patch slab, lane-dense ---------
    # TODO(synk): for stride < kernel_size (overlapping windows) this HBM
    # im2col inflates traffic ~KH*KW/(SH*SW)x; DMA contiguous row bands and
    # form the taps in VMEM instead. With the module default stride ==
    # kernel_size it is a pure permutation, so it is fine here.
    slices = []
    for kh in range(KH):
        for kw in range(KW):
            h0, w0 = kh * DH, kw * DW
            slices.append(
                x[:, :, h0:h0 + SH * (HO - 1) + 1:SH,
                        w0:w0 + SW * (WO - 1) + 1:SW])
    # (T, B, C, HO, WO) -> (T, C, B, HO, WO) -> (T*C, B*HO*WO)
    patches = jnp.stack(slices, axis=0).transpose(0, 2, 1, 3, 4).reshape(TC, L)
    patches = patches.astype(compute_dtype)

    # ---- Fold the depthwise conv into the pointwise matmul ----------------
    dw_w = dw_weight.reshape(C, T)                 # (C, 1, KH, KW) -> (C, T)
    pw_w = pw_weight.reshape(OC, C)                # (OC, C, 1, 1)  -> (OC, C)
    # fused_w[oc, t*C + c] = pw_w[oc, c] * dw_w[c, t]   (matches patch rows)
    fused_w = (pw_w[:, None, :] * dw_w.T[None, :, :]).reshape(OC, TC)
    fused_w = fused_w.astype(compute_dtype)
    # fused bias = pw_b + pw_w @ dw_b, added to the f32 accumulator.
    fused_b = (pw_bias.reshape(OC) + pw_w @ dw_bias.reshape(C)).reshape(OC, 1)
    fused_b = fused_b.astype(jnp.float32)

    # ---- Lane tiling: multiple of 128, sized against VMEM (v7x = 64 MiB) --
    if L <= lane_tile_target:
        lane_tile = pl.cdiv(L, 128) * 128          # single >=128-wide tile
    else:
        lane_tile = lane_tile_target
    in_bytes = jnp.dtype(compute_dtype).itemsize

    def _step_bytes(tile):
        # double-buffered patch tile + double-buffered f32 out tile + weights
        return (2 * TC * tile * in_bytes + 2 * OC * tile * 4
                + OC * TC * in_bytes + OC * 4)

    VMEM_BUDGET = 48 << 20          # conservative: fits v7x's 64 MiB VMEM
    while lane_tile > 128 and _step_bytes(lane_tile) > VMEM_BUDGET:
        lane_tile -= 128
    L_pad = pl.cdiv(L, lane_tile) * lane_tile
    if L_pad != L:
        patches = jnp.pad(patches, ((0, 0), (0, L_pad - L)))
    num_tiles = L_pad // lane_tile
    vmem_limit = int(min(48 << 20, max(4 << 20, 2 * _step_bytes(lane_tile))))

    # TODO(synk): for large C/OC, additionally tile OC (256 on v6e/v7x, 128 on
    # v5e) and the T*C reduction with a VMEM f32 accumulator + pl.when
    # init/finalize instead of loading the full (OC, T*C) weight per step.
    out = pl.pallas_call(
        _fused_dwsep_kernel,
        out_shape=jax.ShapeDtypeStruct((OC, L_pad), jnp.float32),
        grid=(num_tiles,),
        in_specs=[
            pl.BlockSpec((TC, lane_tile), lambda j: (0, j)),
            pl.BlockSpec((OC, TC), lambda j: (0, 0)),
            pl.BlockSpec((OC, 1), lambda j: (0, 0)),
        ],
        out_specs=pl.BlockSpec((OC, lane_tile), lambda j: (0, j)),
        compiler_params=pltpu.CompilerParams(
            dimension_semantics=("parallel",),
            vmem_limit_bytes=vmem_limit),
    )(patches, fused_w, fused_b)

    # (OC, B*HO*WO) -> (B, OC, HO, WO)
    out = out[:, :L].reshape(OC, B, HO, WO).transpose(1, 0, 2, 3)
    return out


def _reference(x, dw_weight, dw_bias, pw_weight, pw_bias, stride, dilation):
    C = x.shape[1]
    dw = lax.conv_general_dilated(
        x, dw_weight, window_strides=stride, padding="VALID",
        rhs_dilation=dilation, feature_group_count=C,
        dimension_numbers=("NCHW", "OIHW", "NCHW"))
    dw = dw + dw_bias.reshape(1, -1, 1, 1)
    out = lax.conv_general_dilated(
        dw, pw_weight, window_strides=(1, 1), padding="VALID",
        dimension_numbers=("NCHW", "OIHW", "NCHW"))
    return out + pw_bias.reshape(1, -1, 1, 1)


if __name__ == "__main__":
    # Module hyperparameters (PyTorch module default: stride = kernel_size).
    in_channels, out_channels = 4, 8
    kernel_size = (3, 3)
    stride = kernel_size
    dilation = (1, 1)

    B, H, W = 2, 16, 16
    key = jax.random.PRNGKey(0)
    kx, k1, k2, k3, k4 = jax.random.split(key, 5)

    x = jax.random.normal(kx, (B, in_channels, H, W), jnp.float32)
    dw_weight = jax.random.normal(
        k1, (in_channels, 1, kernel_size[0], kernel_size[1]), jnp.float32) * 0.1
    dw_bias = jax.random.normal(k2, (in_channels,), jnp.float32) * 0.1
    pw_weight = jax.random.normal(
        k3, (out_channels, in_channels, 1, 1), jnp.float32) * 0.1
    pw_bias = jax.random.normal(k4, (out_channels,), jnp.float32) * 0.1

    ref = _reference(x, dw_weight, dw_bias, pw_weight, pw_bias, stride, dilation)

    # f32 path: tight correctness check.
    out_f32 = depthwise_separable_conv2d(
        x, dw_weight, dw_bias, pw_weight, pw_bias,
        kernel_size=kernel_size, stride=stride, dilation=dilation,
        compute_dtype=jnp.float32)
    out_f32 = jax.block_until_ready(out_f32)
    assert out_f32.shape == ref.shape
    assert jnp.allclose(out_f32, ref, atol=1e-5, rtol=1e-5)

    # bf16 operands (MXU-native on v5e/v6e/v7x), f32 accumulation: looser check.
    out_bf16 = depthwise_separable_conv2d(
        x, dw_weight, dw_bias, pw_weight, pw_bias,
        kernel_size=kernel_size, stride=stride, dilation=dilation,
        compute_dtype=jnp.bfloat16)
    out_bf16 = jax.block_until_ready(out_bf16)
    assert out_bf16.shape == ref.shape
    assert jnp.allclose(out_bf16, ref, atol=2e-2, rtol=2e-2)

    print("KERNEL_OK")
</pallas_src>

<mosaic_0001>
module attributes {stable_mosaic.version = 11 : i64} {
  func.func @_fused_dwsep_kernel(%arg0: i32, %arg1: memref<36x128xf32, #tpu.memory_space<vmem>>, %arg2: memref<8x36xf32, #tpu.memory_space<vmem>>, %arg3: memref<8x1xf32, #tpu.memory_space<vmem>>, %arg4: memref<8x128xf32, #tpu.memory_space<vmem>>) attributes {dimension_semantics = [#tpu.dimension_semantics<parallel>], iteration_bounds = array<i64: 1>, scalar_prefetch = 0 : i64, scratch_operands = 0 : i64, tpu.core_type = #tpu.core_type<tc>, window_params = [{transform_indices = @transform_0, window_bounds = array<i64: 36, 128>}, {pipeline_mode = #tpu.pipeline_mode<synchronous>, transform_indices = @transform_1, window_bounds = array<i64: 8, 36>}, {pipeline_mode = #tpu.pipeline_mode<synchronous>, transform_indices = @transform_2, window_bounds = array<i64: 8, 1>}, {transform_indices = @transform_3, window_bounds = array<i64: 8, 128>}]} {
    %c0 = arith.constant 0 : index
    %c0_0 = arith.constant 0 : index
    %0 = vector.load %arg2[%c0, %c0_0] : memref<8x36xf32, #tpu.memory_space<vmem>>, vector<8x36xf32>
    %c0_1 = arith.constant 0 : index
    %c0_2 = arith.constant 0 : index
    %1 = vector.load %arg1[%c0_1, %c0_2] : memref<36x128xf32, #tpu.memory_space<vmem>>, vector<36x128xf32>
    %cst = arith.constant dense<0.000000e+00> : vector<8x128xf32>
    %2 = tpu.matmul %0, %1, %cst {dimension_numbers = #tpu.dot_dimension_numbers<[1], [0], [0], [1], [0, 0, 1, 1], [], []>} : vector<8x36xf32>, vector<36x128xf32>, vector<8x128xf32> -> vector<8x128xf32>
    %c0_3 = arith.constant 0 : index
    %c0_4 = arith.constant 0 : index
    %3 = vector.load %arg3[%c0_3, %c0_4] : memref<8x1xf32, #tpu.memory_space<vmem>>, vector<8x1xf32>
    %4 = vector.broadcast %3 : vector<8x1xf32> to vector<8x128xf32>
    %5 = arith.addf %2, %4 : vector<8x128xf32>
    %c0_5 = arith.constant 0 : index
    %c0_6 = arith.constant 0 : index
    %6 = vector.load %arg4[%c0_5, %c0_6] : memref<8x128xf32, #tpu.memory_space<vmem>>, vector<8x128xf32>
    tpu.vector_store %arg4[%c0_5, %c0_6], %5 {strides = array<i32>} : memref<8x128xf32, #tpu.memory_space<vmem>>, vector<8x128xf32>,
    return
  }
  func.func @transform_0(%arg0: i32) -> (i32, i32) {
    %c0_i32 = arith.constant 0 : i32
    %c0_i32_0 = arith.constant 0 : i32
    return %c0_i32, %arg0 : i32, i32
  }
  func.func @transform_1(%arg0: i32) -> (i32, i32) {
    %c0_i32 = arith.constant 0 : i32
    %c0_i32_0 = arith.constant 0 : i32
    %c0_i32_1 = arith.constant 0 : i32
    return %c0_i32, %c0_i32_0 : i32, i32
  }
  func.func @transform_2(%arg0: i32) -> (i32, i32) {
    %c0_i32 = arith.constant 0 : i32
    %c0_i32_0 = arith.constant 0 : i32
    %c0_i32_1 = arith.constant 0 : i32
    return %c0_i32, %c0_i32_0 : i32, i32
  }
  func.func @transform_3(%arg0: i32) -> (i32, i32) {
    %c0_i32 = arith.constant 0 : i32
    %c0_i32_0 = arith.constant 0 : i32
    return %c0_i32, %arg0 : i32, i32
  }
}

</mosaic_0001>

<bundles_post_ra>
// kernel: tpu_custom_call.1
= control target key start
LH: loop header
LB: loop body
LE: loop exit
PB: predicated region body
PF: predicated region fallthrough
CT: control target
= control target key end

     0   :  { %8 = vsyncpa [#allocation3], 0  ;;  %s247_s0 = inlined_call_operand.hbm [shape: f32[36,128], index: 0, kind: input, shape index: {}]   ;;  %s248_s1 = inlined_call_operand.vmem [shape: f32[8,36], index: 1, kind: input, shape index: {}]   ;;  %s249_s2 = inlined_call_operand.vmem [shape: f32[8,1], index: 2, kind: input, shape index: {}]   ;;  %s250_s3 = inlined_call_operand.hbm [shape: f32[8,128], index: 3, kind: output, shape index: {}]  }
   0x1   :  { %9 = vsyncpa [#allocation4], 0  ;;  %s208_s12 = smov [#allocation2]  }
   0x2   :  { %s15_s13 = sshll.u32 %s208_s12, 4  ;;  %s16_s13 = int_to_ptr.vmem [resolvable:$true] %s15_s13 }
   0x3   :  { %s172_s14 = scalar_lea.vmem %s16_s13, 640  ;;  %p177_p1 = scmp.lt.s32.totalorder %s16_s13, %s16_s13 }
   0x4   :  { %p173_p0 = scmp.ne.s32.totalorder %s16_s13, %s172_s14  ;;  %p178_p2 = scmp.lt.s32.totalorder %s172_s14, %s172_s14 }
   0x6   :  { %p179_p3 = por %p178_p2, %p177_p1 }
   0x8   :  { %p180_p4 = pnand %p179_p3, %p173_p0 }
   0xa   :  { %183 = shalt.err (!%p180_p4)
}
   0xb   :  { %s209_s15 = smov 128   ;;  %s210_s16 = smov 8  }
   0xc   :  { %21 = dma.hbm_to_vmem [thread:$0]  %s247_s0, 640, %s16_s13, [#allocation3], %s209_s15, %s209_s15, %s210_s16  }
   0xd   :  { %204 = dma.done.wait [#allocation3], 640  }
   0xe   :  { %205 = vsyncadd [#allocation3], 4294966656  ;;  %v211_v0 = vmov 0.0   ;;  %vm212_vm0 = vmmov 0   ;;  %v213_v1 = vmov 0   ;;  %vm45_vm1 = vcmask 1043456  }
   0xf   :  { %143 = vmatprep.subr.mxu0 %v211_v0  ;;  %153 = vmatprep.mubr.msk.f32.mxu0 %vm212_vm0, %v211_v0  ;;  %v34_v2 = vld [vmem:[#allocation2 + $0x20] sm:$0xf]  ;;  %v33_v3 = vld [vmem:[#allocation2 + $0x18] sm:$0xff]  ;;  %v32_v4 = vld [vmem:[#allocation2 + $0x10] sm:$0xff]  ;;  %vm41_vm2 = vcmask 293888   ;;  %s214_s22 = smov [#allocation5]  }
  0x10   :  { %163 = vset.pattern.permute.xlu0 %v213_v1  ;;  %144 = vmatpush3.msk.msra.mxu0 %vm45_vm1, %v34_v2  ;;  %v35_v5 = vld [vmem:[%s249_s2] sm:$0xff]  ;;  %v31_v6 = vld [vmem:[#allocation2 + $0x8] sm:$0xff]  ;;  %s126_s23 = sshll.u32 %s214_s22, 4  ;;  %s127_s23 = int_to_ptr.vmem [resolvable:$true] %s126_s23 }
  0x11   :  { %145 = vmatprep.subr.mxu0 %v211_v0  ;;  %38 = vperm.xlu0 %163, %v35_v5   ;;  %v30_v7 = vld [vmem:[#allocation2] sm:$0xff]  ;;  %s184_s2 = scalar_lea.vmem %s127_s23, 128  ;;  %p189_p6 = scmp.lt.s32.totalorder %s127_s23, %s127_s23 }
  0x12   :  { %146 = vmatpush3.msra.mxu0 %v33_v3  ;;  %v29_v8 = vld [vmem:[%s248_s1] sm:$0xff]  ;;  %p185_p5 = scmp.ne.s32.totalorder %s127_s23, %s184_s2  ;;  %p190_p7 = scmp.lt.s32.totalorder %s184_s2, %s184_s2 }
  0x13   :  { %147 = vmatprep.subr.mxu0 %v211_v0 }
  0x14   :  { %148 = vmatpush3.msra.mxu0 %v32_v4  ;;  %p191_p8 = por %p190_p7, %p189_p6 }
  0x15   :  { %149 = vmatprep.subr.mxu0 %v211_v0 }
  0x16   :  { %150 = vmatpush3.msra.mxu0 %v31_v6  ;;  %p192_p9 = pnand %p191_p8, %p185_p5 }
  0x17   :  { %151 = vmatprep.subr.mxu0 %v211_v0 }
  0x18   :  { %152 = vmatpush3.msra.mxu0 %v30_v7 }
  0x19   :  { %154 = vmatmul.mubr.msk.f32.vlgmr.msra.gmra.mxu0 %vm41_vm2, %v29_v8 }
  0x8c   :  { %v39_v9 = vpop.permute.xlu0 %38 }
  0xd9   :  { %v115_v10 = vpop.f32.mrf.mxu0 }
  0xda   :  { %v116_v11 = vadd.f32 %v115_v10, %v39_v9 }
  0xdb   :  { %v155_v12 = vpop.f32.mrf.mxu0 }
  0xdc   :  { %119 = vst [vmem:[#allocation5] sm:$0xff] %v116_v11 }
  0xdd   :  { %195 = shalt.err (!%p192_p9)
}
  0xde   :  { %129 = dma.vmem_to_hbm [thread:$0]  %s127_s23, 128, %s250_s3, [#allocation4]  }
  0xdf   :  { %206 = dma.done.wait [#allocation4], 128  }
  0xe0   :  { %207 = vsyncadd [#allocation4], 4294967168 }
  0xe1   :  { %133 = vsyncpa [#allocation3], 1 }
  0xe2   :  { %134 = vsyncpa [#allocation4], 1 }

</bundles_post_ra>
